<compile_context>
chip_gen: v5e
topology: v5e:2x2
jax: 0.10.0
libtpu: 0.0.40
codegen_flags: <defaults>
</compile_context>

<pallas_src>
import math

import jax
import jax.numpy as jnp
from jax import lax
from jax.experimental import pallas as pl
from jax.experimental.pallas import tpu as pltpu

P_DROP = 0.4
_SCALE = 1.0 / (1.0 - P_DROP)
_DROP_THRESH_24 = int(round(P_DROP * (1 << 24)))  # drop iff top-24-bit draw < thresh

LANES = 128
MAX_ROWS_PER_TILE = 512

# Defensive: name changed across recent JAX releases.
_CompilerParams = getattr(pltpu, "CompilerParams", None) or getattr(
    pltpu, "TPUCompilerParams"
)


def _mix_u32(x):
    """splitmix32-style finalizer; all uint32 VPU ops (works on Mosaic + interpret)."""
    x = x ^ (x >> jnp.uint32(16))
    x = x * jnp.uint32(0x7FEB352D)
    x = x ^ (x >> jnp.uint32(15))
    x = x * jnp.uint32(0x846CA68B)
    x = x ^ (x >> jnp.uint32(16))
    return x


def dropout_kernel(seed_ref, x_ref, o_ref):
    tile_rows, lanes = x_ref.shape
    # Global element index of every slot in this tile (unique across the grid,
    # so every tile draws distinct random bits without extra seed plumbing).
    row = lax.broadcasted_iota(jnp.uint32, (tile_rows, lanes), 0)
    col = lax.broadcasted_iota(jnp.uint32, (tile_rows, lanes), 1)
    tile_off = jnp.uint32(pl.program_id(0) * tile_rows)
    gidx = (row + tile_off) * jnp.uint32(lanes) + col

    seed = seed_ref[0].astype(jnp.uint32)
    # Counter-based PRNG: Weyl-sequence of the global index, perturbed by the
    # per-call seed, pushed through the splitmix32 finalizer.
    h = _mix_u32(
        gidx * jnp.uint32(0x9E3779B9) + seed * jnp.uint32(0x85EBCA6B) + jnp.uint32(1)
    )
    # Keep/drop in the integer domain on the top 24 bits (exact, no f32 convert).
    keep = (h >> jnp.uint32(8)) >= jnp.uint32(_DROP_THRESH_24)

    x = x_ref[...]
    o_ref[...] = jnp.where(
        keep, x * jnp.float32(_SCALE), jnp.zeros_like(x)
    ).astype(o_ref.dtype)


def flatten_dropout(x, seed, *, training=True):
    """x: (N, C, 1, 1). Returns (N, C): torch.flatten(x, 1) + Dropout(p=0.4).

    Pass a fresh `seed` per forward call (torch Dropout draws a new mask each time).
    """
    n = x.shape[0]
    c = math.prod(x.shape[1:])
    x2d = x.reshape(n, c)
    if not training:
        return x2d  # dropout is identity in eval mode

    total = n * c
    # Sublane-dense layout: pack the flat slab as (rows, 128) when possible.
    if total >= LANES and total % LANES == 0:
        rows, lanes = total // LANES, LANES
    else:
        rows, lanes = n, c  # fallback: block == full array dims (still legal)
    x_slab = x2d.reshape(rows, lanes)

    tile_rows = rows if rows <= MAX_ROWS_PER_TILE else MAX_ROWS_PER_TILE
    grid = (pl.cdiv(rows, tile_rows),)
    seed_arr = jnp.asarray([seed], dtype=jnp.int32)

    out = pl.pallas_call(
        dropout_kernel,
        out_shape=jax.ShapeDtypeStruct((rows, lanes), x2d.dtype),
        grid=grid,
        in_specs=[
            pl.BlockSpec(memory_space=pltpu.SMEM),           # per-call seed scalar
            pl.BlockSpec((tile_rows, lanes), lambda i: (i, 0)),
        ],
        out_specs=pl.BlockSpec((tile_rows, lanes), lambda i: (i, 0)),
        compiler_params=_CompilerParams(dimension_semantics=("parallel",)),
    )(seed_arr, x_slab)

    return out.reshape(n, c)


if __name__ == "__main__":
    key = jax.random.PRNGKey(0)
    # matches the module: x499 = torch.randn([1, 1792, 1, 1])
    x499 = jax.random.normal(key, (1, 1792, 1, 1), dtype=jnp.float32)

    out = flatten_dropout(x499, seed=0, training=True)
    out = jax.block_until_ready(out)

    assert out.shape == (1, 1792), out.shape
    assert out.dtype == jnp.float32

    # Sanity: surviving elements are exact scaled copies of the input, rest are zero.
    x2d = x499.reshape(1, 1792)
    kept = out != 0
    expected = jnp.where(kept, x2d * jnp.float32(_SCALE), jnp.float32(0.0))
    assert bool(jnp.allclose(out, expected, rtol=1e-6, atol=1e-6))

    # Sanity: keep rate roughly 1 - p = 0.6 (loose bounds, catches a broken PRNG).
    keep_frac = float(jnp.mean(kept.astype(jnp.float32)))
    assert 0.4 < keep_frac < 0.8, keep_frac

    print("KERNEL_OK")
</pallas_src>

<mosaic_0001>
module attributes {stable_mosaic.version = 11 : i64} {
  func.func @dropout_kernel(%arg0: i32, %arg1: memref<1xi32, #tpu.memory_space<smem>>, %arg2: memref<14x128xf32, #tpu.memory_space<vmem>>, %arg3: memref<14x128xf32, #tpu.memory_space<vmem>>) attributes {dimension_semantics = [#tpu.dimension_semantics<parallel>], iteration_bounds = array<i64: 1>, scalar_prefetch = 0 : i64, scratch_operands = 0 : i64, tpu.core_type = #tpu.core_type<tc>, window_params = [{transform_indices = @transform_0, window_bounds = array<i64: 1>}, {transform_indices = @transform_1, window_bounds = array<i64: 14, 128>}, {transform_indices = @transform_2, window_bounds = array<i64: 14, 128>}]} {
    %0 = tpu.iota {dimensions = array<i32: 0>} : vector<14x128xi32>
    %1 = tpu.iota {dimensions = array<i32: 1>} : vector<14x128xi32>
    %c14_i32 = arith.constant 14 : i32
    %2 = arith.muli %arg0, %c14_i32 : i32
    %3 = vector.broadcast %2 : i32 to vector<14x128xi32>
    %4 = arith.addi %0, %3 : vector<14x128xi32>
    %c128_i32 = arith.constant 128 : i32
    %5 = vector.broadcast %c128_i32 : i32 to vector<14x128xi32>
    %6 = arith.muli %4, %5 : vector<14x128xi32>
    %7 = arith.addi %6, %1 : vector<14x128xi32>
    %c0 = arith.constant 0 : index
    %8 = memref.load %arg1[%c0] : memref<1xi32, #tpu.memory_space<smem>>
    %c-1640531527_i32 = arith.constant -1640531527 : i32
    %9 = vector.broadcast %c-1640531527_i32 : i32 to vector<14x128xi32>
    %10 = arith.muli %7, %9 : vector<14x128xi32>
    %c-2048144789_i32 = arith.constant -2048144789 : i32
    %11 = arith.muli %8, %c-2048144789_i32 : i32
    %12 = vector.broadcast %11 : i32 to vector<14x128xi32>
    %13 = arith.addi %10, %12 : vector<14x128xi32>
    %c1_i32 = arith.constant 1 : i32
    %14 = vector.broadcast %c1_i32 : i32 to vector<14x128xi32>
    %15 = arith.addi %13, %14 : vector<14x128xi32>
    %c16_i32 = arith.constant 16 : i32
    %16 = vector.broadcast %c16_i32 : i32 to vector<14x128xi32>
    %17 = arith.shrui %15, %16 : vector<14x128xi32>
    %18 = arith.xori %15, %17 : vector<14x128xi32>
    %c2146121005_i32 = arith.constant 2146121005 : i32
    %19 = vector.broadcast %c2146121005_i32 : i32 to vector<14x128xi32>
    %20 = arith.muli %18, %19 : vector<14x128xi32>
    %c15_i32 = arith.constant 15 : i32
    %21 = vector.broadcast %c15_i32 : i32 to vector<14x128xi32>
    %22 = arith.shrui %20, %21 : vector<14x128xi32>
    %23 = arith.xori %20, %22 : vector<14x128xi32>
    %c-2073254261_i32 = arith.constant -2073254261 : i32
    %24 = vector.broadcast %c-2073254261_i32 : i32 to vector<14x128xi32>
    %25 = arith.muli %23, %24 : vector<14x128xi32>
    %c16_i32_0 = arith.constant 16 : i32
    %26 = vector.broadcast %c16_i32_0 : i32 to vector<14x128xi32>
    %27 = arith.shrui %25, %26 : vector<14x128xi32>
    %28 = arith.xori %25, %27 : vector<14x128xi32>
    %c8_i32 = arith.constant 8 : i32
    %29 = vector.broadcast %c8_i32 : i32 to vector<14x128xi32>
    %30 = arith.shrui %28, %29 : vector<14x128xi32>
    %c6710886_i32 = arith.constant 6710886 : i32
    %31 = vector.broadcast %c6710886_i32 : i32 to vector<14x128xi32>
    %32 = arith.cmpi uge, %30, %31 : vector<14x128xi32>
    %c0_1 = arith.constant 0 : index
    %c0_2 = arith.constant 0 : index
    %33 = vector.load %arg2[%c0_1, %c0_2] : memref<14x128xf32, #tpu.memory_space<vmem>>, vector<14x128xf32>
    %cst = arith.constant 1.66666663 : f32
    %34 = vector.broadcast %cst : f32 to vector<14x128xf32>
    %35 = arith.mulf %33, %34 : vector<14x128xf32>
    %cst_3 = arith.constant 0.000000e+00 : f32
    %36 = vector.broadcast %cst_3 : f32 to vector<14x128xf32>
    %37 = arith.select %32, %35, %36 : vector<14x128xi1>, vector<14x128xf32>
    %c0_4 = arith.constant 0 : index
    %c0_5 = arith.constant 0 : index
    %38 = vector.load %arg3[%c0_4, %c0_5] : memref<14x128xf32, #tpu.memory_space<vmem>>, vector<14x128xf32>
    tpu.vector_store %arg3[%c0_4, %c0_5], %37 {strides = array<i32>} : memref<14x128xf32, #tpu.memory_space<vmem>>, vector<14x128xf32>,
    return
  }
  func.func @transform_0(%arg0: i32) -> i32 {
    %c0_i32 = arith.constant 0 : i32
    %c0_i32_0 = arith.constant 0 : i32
    return %c0_i32 : i32
  }
  func.func @transform_1(%arg0: i32) -> (i32, i32) {
    %c0_i32 = arith.constant 0 : i32
    %c0_i32_0 = arith.constant 0 : i32
    return %arg0, %c0_i32 : i32, i32
  }
  func.func @transform_2(%arg0: i32) -> (i32, i32) {
    %c0_i32 = arith.constant 0 : i32
    %c0_i32_0 = arith.constant 0 : i32
    return %arg0, %c0_i32 : i32, i32
  }
}

</mosaic_0001>

<bundles_post_ra>
// kernel: tpu_custom_call.1
= control target key start
LH: loop header
LB: loop body
LE: loop exit
PB: predicated region body
PF: predicated region fallthrough
CT: control target
= control target key end

     0   :  { %8 = vsyncpa [#allocation4], 0  ;;  %s194_s0 = inlined_call_operand.<no memory space> [shape: s32[1], index: 0, kind: input, shape index: {}]   ;;  %s195_s1 = inlined_call_operand.hbm [shape: f32[14,128], index: 1, kind: input, shape index: {}]   ;;  %s196_s2 = inlined_call_operand.hbm [shape: f32[14,128], index: 2, kind: output, shape index: {}]  }
   0x1   :  { %9 = vsyncpa [#allocation5], 0  ;;  %s16_s11 = sshll.u32 %s195_s1, 4  ;;  %s160_s12 = smov [#allocation3]   ;;  %s17_s11 = int_to_ptr.hbm [resolvable:$true] %s16_s11 }
   0x2   :  { %s18_s13 = sshll.u32 %s160_s12, 4  ;;  %s161_s14 = smov 128   ;;  %s19_s13 = int_to_ptr.vmem [resolvable:$true] %s18_s13 }
   0x3   :  { %s162_s15 = smov 8  }
   0x4   :  { %24 = dma.hbm_to_vmem [thread:$0]  %s17_s11, 256, %s19_s13, [#allocation4], %s161_s14, %s161_s14, %s162_s15  }
   0x5   :  { %156 = dma.done.wait [#allocation4], 256  }
   0x6   :  { %157 = vsyncadd [#allocation4], 4294967040  ;;  %v29_v0 = vlaneseq  ;;  %s45_s18 = smul.u32 2246822507, %s194_s0  ;;  %v75_v29 = vld [vmem:[#allocation3] sm:$0xff]  ;;  %s163_s0 = smov [#allocation6]  }
   0x7   :  { %v76_v33 = vld [vmem:[#allocation3 + $0x8] sm:$0x3f]  ;;  %v77_v34 = vmul.f32 1.6666666, %v75_v29  ;;  %s87_s1 = sshll.u32 %s163_s0, 4  ;;  %s89_s21 = sshll.u32 %s196_s2, 4  ;;  %s88_s1 = int_to_ptr.vmem [resolvable:$true] %s87_s1  ;;  %s90_s21 = int_to_ptr.hbm [resolvable:$true] %s89_s21 }
   0x8   :  { %v30_v1 = vshrl.u32 %v29_v0, 7  ;;  %v33_v2 = vand.u32 127, %v29_v0  ;;  %v46_v7 = vstv %s45_s18  ;;  %v78_v37 = vmul.f32 1.6666666, %v76_v33 }
   0xa   :  { %v38_v3 = vmul.u32 128, %v30_v1  ;;  %v31_v4 = vadd.s32 8, %v30_v1 }
   0xc   :  { %v40_v5 = vadd.s32 %v38_v3, %v33_v2  ;;  %v39_v6 = vmul.u32 128, %v31_v4 }
   0xe   :  { %v43_v8 = vmul.u32 2654435769, %v40_v5  ;;  %v41_v9 = vadd.s32 %v39_v6, %v33_v2 }
  0x10   :  { %v47_v10 = vadd.s32 %v46_v7, %v43_v8  ;;  %v44_v11 = vmul.u32 2654435769, %v41_v9 }
  0x12   :  { %v49_v12 = vadd.s32 1, %v47_v10  ;;  %v48_v13 = vadd.s32 %v46_v7, %v44_v11 }
  0x14   :  { %v51_v14 = vshrl.u32 %v49_v12, 16  ;;  %v50_v15 = vadd.s32 1, %v48_v13 }
  0x16   :  { %v53_v16 = vxor.u32 %v51_v14, %v49_v12  ;;  %v52_v17 = vshrl.u32 %v50_v15, 16 }
  0x18   :  { %v55_v18 = vmul.u32 2146121005, %v53_v16  ;;  %v54_v19 = vxor.u32 %v52_v17, %v50_v15 }
  0x1a   :  { %v57_v20 = vshrl.u32 %v55_v18, 15  ;;  %v56_v21 = vmul.u32 2146121005, %v54_v19 }
  0x1c   :  { %v59_v22 = vxor.u32 %v57_v20, %v55_v18  ;;  %v58_v23 = vshrl.u32 %v56_v21, 15 }
  0x1e   :  { %v61_v24 = vmul.u32 2221713035, %v59_v22  ;;  %v60_v25 = vxor.u32 %v58_v23, %v56_v21 }
  0x20   :  { %v63_v26 = vshrl.u32 %v61_v24, 16  ;;  %v62_v27 = vmul.u32 2221713035, %v60_v25 }
  0x22   :  { %v65_v28 = vxor.u32 %v63_v26, %v61_v24  ;;  %v64_v30 = vshrl.u32 %v62_v27, 16 }
  0x24   :  { %v67_v31 = vshrl.u32 %v65_v28, 8  ;;  %v66_v32 = vxor.u32 %v64_v30, %v62_v27 }
  0x26   :  { %v102_v35 = vxor.u32 2147483648, %v67_v31  ;;  %v68_v36 = vshrl.u32 %v66_v32, 8 }
  0x28   :  { %vm71_vm0 = vcmp.ge.s32.totalorder %v102_v35, 2154194534  ;;  %v103_v38 = vxor.u32 2147483648, %v68_v36 }
  0x29   :  { %v79_v39 = vsel %vm71_vm0, %v77_v34, 0.0 }
  0x2a   :  { %81 = vst [vmem:[#allocation6] sm:$0xff] %v79_v39  ;;  %vm74_vm1 = vcmp.ge.s32.totalorder %v103_v38, 2154194534 }
  0x2b   :  { %v80_v40 = vsel %vm74_vm1, %v78_v37, 0.0 }
  0x2c   :  { %82 = vst [vmem:[#allocation6 + $0x8] sm:$0x3f] %v80_v40 }
  0x2d   :  { %95 = dma.vmem_to_hbm [thread:$0]  %s88_s1, 256, %s90_s21, [#allocation5], %s161_s14, %s161_s14, %s162_s15  }
  0x2e   :  { %158 = dma.done.wait [#allocation5], 256  }
  0x2f   :  { %159 = vsyncadd [#allocation5], 4294967040 }
  0x30   :  { %100 = vsyncpa [#allocation4], 1 }
  0x31   :  { %101 = vsyncpa [#allocation5], 1 }

</bundles_post_ra>
